<compile_context>
chip_gen: v7x
topology: tpu7x:2x2x1
jax: 0.10.0
libtpu: 0.0.40
codegen_flags: <defaults>
</compile_context>

<pallas_src>
import functools

import jax
import jax.numpy as jnp
from jax.experimental import pallas as pl
from jax.experimental.pallas import tpu as pltpu


# ----------------------------------------------------------------------------
# Small helpers
# ----------------------------------------------------------------------------
def _to_2tuple(x):
    if isinstance(x, (tuple, list)):
        assert len(x) == 2
        return tuple(int(v) for v in x)
    return (int(x), int(x))


def _is_pair(x):
    return isinstance(x, (tuple, list)) and len(x) >= 2


def _round_up(v, m):
    return -(-v // m) * m


def _compute_pads(h, w, th, tw):
    pad_row, pad_col = th - h, tw - w
    pad_l = pad_col // 2
    pad_r = pad_col - pad_l
    pad_t = pad_row // 2
    pad_b = pad_row - pad_t
    return pad_t, pad_b, pad_l, pad_r


@functools.lru_cache(maxsize=None)
def _chip_config():
    """Generation-aware VMEM budget / limit / megacore split.

    v7x  (<=64 MiB VMEM/TC, 2 TCs): tight block budget, keep >=2 grid steps.
    v5e/v6e (128 MiB VMEM, 1 TC):  big blocks, no forced split.
    Falls back to the conservative (v7x-like) setting if the query fails.
    """
    vmem_cap = None
    try:
        info = pltpu.get_tpu_info()
        vmem_cap = int(getattr(info, "vmem_capacity_bytes"))
    except Exception:
        vmem_cap = None
    if vmem_cap is not None and vmem_cap > 64 * 1024 * 1024:
        # v5e / v6e: single TensorCore, 128 MiB physical VMEM.
        return {"budget": 64 << 20, "limit": 96 << 20, "split": 1}
    # v7x (or unknown): 64 MiB VMEM per TC, 2 TensorCores.
    return {"budget": 24 << 20, "limit": 32 << 20, "split": 2}


# ----------------------------------------------------------------------------
# In-register padded-tile construction (single aligned full-tile store)
# ----------------------------------------------------------------------------
def _padded_tile(x, pad_t, pad_b, pad_l, pad_r, fill, dt):
    """Centered constant pad of a (planes, h, w) register value.

    Equivalent to jnp.pad(..., constant_values=fill) but built only from
    concatenate/full (guaranteed Mosaic lowerings).  The caller stores the
    result as ONE lane-dense full-tile store, so no masked vst.msk sequences
    for the misaligned interior window or the narrow left/right strips.
    """
    x = x.astype(dt)
    p, hh, ww = x.shape
    if pad_l or pad_r:
        parts = []
        if pad_l:
            parts.append(jnp.full((p, hh, pad_l), fill, dtype=dt))
        parts.append(x)
        if pad_r:
            parts.append(jnp.full((p, hh, pad_r), fill, dtype=dt))
        x = jnp.concatenate(parts, axis=2)
        ww = ww + pad_l + pad_r
    if pad_t or pad_b:
        parts = []
        if pad_t:
            parts.append(jnp.full((p, pad_t, ww), fill, dtype=dt))
        parts.append(x)
        if pad_b:
            parts.append(jnp.full((p, pad_b, ww), fill, dtype=dt))
        x = jnp.concatenate(parts, axis=1)
    return x


# ----------------------------------------------------------------------------
# Path 1: plane-fused blocks (whole (h,w) plane per block; bc planes per step)
# ----------------------------------------------------------------------------
def _make_plane_kernel(pads, fill, num_imgs):
    pad_t, pad_b, pad_l, pad_r = pads

    def kernel(*refs):
        in_refs = refs[:num_imgs]
        out_refs = refs[num_imgs:]
        for x_ref, o_ref in zip(in_refs, out_refs):
            o_ref[...] = _padded_tile(
                x_ref[...], pad_t, pad_b, pad_l, pad_r, fill, o_ref.dtype)

    return kernel


def _pick_block_planes(num_planes, h, w, th, tw, itemsize, cfg, num_imgs=1):
    """Planes fused per grid step, or None if one plane overflows the budget."""
    bytes_per_plane = num_imgs * (h * w + th * tw) * itemsize
    bc = cfg["budget"] // (2 * bytes_per_plane)   # double-buffered in+out tiles
    if bc < 1:
        return None
    bc = min(bc, num_planes)
    split = cfg["split"]
    if split > 1 and num_planes >= split:
        # Keep >= `split` grid steps so both v7x TensorCores get a share.
        bc = min(bc, pl.cdiv(num_planes, split))
    return max(1, int(bc))


def _pad_planes_call(xs, th, tw, pads, fill, bc, cfg):
    num_imgs = len(xs)
    num_planes, h, w = xs[0].shape
    dtype = xs[0].dtype
    itemsize = jnp.dtype(dtype).itemsize

    grid = (pl.cdiv(num_planes, bc),)
    in_specs = [pl.BlockSpec((bc, h, w), lambda i: (i, 0, 0))
                for _ in range(num_imgs)]
    out_specs = [pl.BlockSpec((bc, th, tw), lambda i: (i, 0, 0))
                 for _ in range(num_imgs)]
    out_shape = [jax.ShapeDtypeStruct((num_planes, th, tw), dtype)
                 for _ in range(num_imgs)]
    bytes_accessed = num_imgs * num_planes * (h * w + th * tw) * itemsize

    outs = pl.pallas_call(
        _make_plane_kernel(pads, fill, num_imgs),
        out_shape=out_shape,
        grid=grid,
        in_specs=in_specs,
        out_specs=out_specs,
        compiler_params=pltpu.CompilerParams(
            dimension_semantics=("parallel",),
            vmem_limit_bytes=cfg["limit"],
        ),
        cost_estimate=pl.CostEstimate(
            flops=0, transcendentals=0, bytes_accessed=bytes_accessed),
    )(*xs)
    return list(outs)


# ----------------------------------------------------------------------------
# Path 2: row-tiled blocks (for planes too large for VMEM)
# ----------------------------------------------------------------------------
def _make_row_kernel(bh, h, pad_t, pad_l, pad_r, fill, rd):
    lo = pad_t
    hi = pad_t + h

    def finish(rows, o_ref, j):
        dt = o_ref.dtype
        padded = _padded_tile(rows, 0, 0, pad_l, pad_r, fill, dt)
        row_ids = j * bh + jax.lax.broadcasted_iota(jnp.int32, (1, bh, 1), 1)
        valid = (row_ids >= lo) & (row_ids < hi)
        # Rows outside the source image become the constant fill.
        o_ref[...] = jnp.where(valid, padded, jnp.array(fill, dtype=dt))

    if rd == 0:
        # Output row blocks align with input row blocks: one input tile.
        def kernel(a_ref, o_ref):
            finish(a_ref[...], o_ref, pl.program_id(1))
        return kernel

    keep = bh - rd  # rows taken from the head of block B (tail offset in A)

    def kernel(a_ref, b_ref, o_ref):
        # Input rows for this output block straddle two consecutive input row
        # blocks; stitch them with static offsets (rd = pad_t % bh).
        rows = jnp.concatenate([a_ref[:, keep:, :], b_ref[:, :keep, :]], axis=1)
        finish(rows, o_ref, pl.program_id(1))

    return kernel


def _pick_row_block(h, w, th, tw, itemsize, cfg):
    # Double-buffered footprint: two (bh, w) input tiles + one (bh, tw) output.
    denom = 2 * (2 * w + tw) * itemsize
    bh = cfg["budget"] // denom
    bh = max(32, (bh // 32) * 32)       # sublane-friendly for f32/bf16/int8
    bh = min(bh, _round_up(th, 32))
    return int(bh)


def _pad_rows_call(x, th, tw, pads, fill, bh, cfg):
    pad_t, pad_b, pad_l, pad_r = pads
    num_planes, h, w = x.shape
    dtype = x.dtype
    itemsize = jnp.dtype(dtype).itemsize

    nj = pl.cdiv(th, bh)            # output row blocks (last may be partial)
    nbi = pl.cdiv(h, bh)            # input row blocks (last may be partial)
    qd, rd = divmod(pad_t, bh)
    b_off = qd + (1 if rd else 0)

    def map_a(i, j):
        blk = jnp.minimum(jnp.maximum(j - b_off, 0), nbi - 1)
        return (i, blk, 0)

    def map_b(i, j):
        blk = jnp.minimum(jnp.maximum(j - b_off + 1, 0), nbi - 1)
        return (i, blk, 0)

    in_specs = [pl.BlockSpec((1, bh, w), map_a)]
    xs = (x,)
    if rd:
        in_specs.append(pl.BlockSpec((1, bh, w), map_b))
        xs = (x, x)

    n_in_reads = 2 if rd else 1
    bytes_accessed = num_planes * (n_in_reads * h * w + th * tw) * itemsize

    return pl.pallas_call(
        _make_row_kernel(bh, h, pad_t, pad_l, pad_r, fill, rd),
        out_shape=jax.ShapeDtypeStruct((num_planes, th, tw), dtype),
        grid=(num_planes, nj),
        in_specs=in_specs,
        out_specs=pl.BlockSpec((1, bh, tw), lambda i, j: (i, j, 0)),
        compiler_params=pltpu.CompilerParams(
            dimension_semantics=("parallel", "parallel"),
            vmem_limit_bytes=cfg["limit"],
        ),
        cost_estimate=pl.CostEstimate(
            flops=0, transcendentals=0, bytes_accessed=bytes_accessed),
    )(*xs)


# ----------------------------------------------------------------------------
# Public wrappers
# ----------------------------------------------------------------------------
def adaptive_pad_single(x, target_size, fill=0, row_block=None):
    """Pad one NCHW tensor to target_size with a centered constant pad."""
    n, c, h, w = x.shape
    th, tw = _to_2tuple(target_size)
    assert th >= h and tw >= w, (
        f"Target size {(th, tw)} should be larger than image size ({h}, {w})")
    pads = _compute_pads(h, w, th, tw)
    cfg = _chip_config()
    itemsize = jnp.dtype(x.dtype).itemsize
    num_planes = n * c
    x_flat = x.reshape(num_planes, h, w)

    bc = None if row_block is not None else _pick_block_planes(
        num_planes, h, w, th, tw, itemsize, cfg)
    if bc is not None:
        out_flat = _pad_planes_call([x_flat], th, tw, pads, fill, bc, cfg)[0]
    else:
        bh = row_block if row_block is not None else _pick_row_block(
            h, w, th, tw, itemsize, cfg)
        out_flat = _pad_rows_call(x_flat, th, tw, pads, fill, bh, cfg)
    return out_flat.reshape(n, c, th, tw)


def _adaptive_pad_pair_fused(imgs, target_size, fill):
    """Pad all same-shape images of a pair with ONE fused pallas_call."""
    n, c, h, w = imgs[0].shape
    th, tw = target_size
    assert th >= h and tw >= w
    pads = _compute_pads(h, w, th, tw)
    cfg = _chip_config()
    itemsize = jnp.dtype(imgs[0].dtype).itemsize
    num_planes = n * c
    bc = _pick_block_planes(num_planes, h, w, th, tw, itemsize, cfg,
                            num_imgs=len(imgs))
    if bc is None:
        return None  # too big to fuse under the VMEM budget
    xs_flat = [im.reshape(num_planes, h, w) for im in imgs]
    outs = _pad_planes_call(xs_flat, th, tw, pads, fill, bc, cfg)
    return [o.reshape(n, c, th, tw) for o in outs]


def paired_adaptive_padding(imgs, target_size, fill=0, padding_mode="constant"):
    """Forward pass of PairedAdaptivePadding.

    `imgs` may be a single NCHW array or a pair/list of NCHW arrays; each
    element is padded independently (centered) to `target_size`.
    """
    # TODO(synk): only the module's default 'constant' padding_mode is implemented.
    assert padding_mode == "constant", "only constant padding is implemented"
    target_size = _to_2tuple(target_size)
    if _is_pair(imgs):
        imgs = list(imgs)
        th, tw = target_size
        same = all(im.shape == imgs[0].shape and im.dtype == imgs[0].dtype
                   for im in imgs)
        fits = all(im.ndim == 4 and th >= im.shape[2] and tw >= im.shape[3]
                   for im in imgs)
        if same and fits:
            fused = _adaptive_pad_pair_fused(imgs, target_size, fill)
            if fused is not None:
                return fused
        return [adaptive_pad_single(im, target_size, fill) for im in imgs]
    return adaptive_pad_single(imgs, target_size, fill)


def _reference_pad(x, target_size, fill=0):
    """Pure-JAX reference for correctness checking."""
    th, tw = target_size
    _, _, h, w = x.shape
    pad_t, pad_b, pad_l, pad_r = _compute_pads(h, w, th, tw)
    return jnp.pad(x, ((0, 0), (0, 0), (pad_t, pad_b), (pad_l, pad_r)),
                   mode="constant", constant_values=fill)


# ----------------------------------------------------------------------------
# Demo / self-test
# ----------------------------------------------------------------------------
if __name__ == "__main__":
    key = jax.random.PRNGKey(0)
    k1, k2, k3, k4, k5 = jax.random.split(key, 5)

    target_size = (24, 24)  # (th, tw)
    fill = 0.0

    # 1) Paired input with different spatial sizes -> two kernels under one jit.
    x_a = jax.random.normal(k1, (2, 4, 16, 16), dtype=jnp.float32)
    x_b = jax.random.normal(k2, (2, 4, 12, 14), dtype=jnp.float32)
    pad_pair = jax.jit(
        lambda a, b: tuple(paired_adaptive_padding([a, b], target_size, fill=fill)))
    outs = jax.block_until_ready(pad_pair(x_a, x_b))
    assert outs[0].shape == (2, 4, 24, 24) and outs[1].shape == (2, 4, 24, 24)
    assert jnp.array_equal(outs[0], _reference_pad(x_a, target_size, fill))
    assert jnp.array_equal(outs[1], _reference_pad(x_b, target_size, fill))

    # 2) Paired input with identical shapes -> single fused pallas_call.
    x_c = jax.random.normal(k3, (2, 4, 16, 16), dtype=jnp.float32)
    outs2 = [jax.block_until_ready(o)
             for o in paired_adaptive_padding([x_a, x_c], target_size, fill=fill)]
    assert jnp.array_equal(outs2[0], _reference_pad(x_a, target_size, fill))
    assert jnp.array_equal(outs2[1], _reference_pad(x_c, target_size, fill))

    # 3) Single image, zero pad along width (w == tw).
    x_d = jax.random.normal(k4, (1, 3, 16, 24), dtype=jnp.float32)
    out_d = jax.block_until_ready(
        paired_adaptive_padding(x_d, target_size, fill=fill))
    assert jnp.array_equal(out_d, _reference_pad(x_d, target_size, fill))

    # 4) Row-tiled path (chosen automatically for planes that overflow the VMEM
    #    budget); forced here at small shapes.  Exercises the two-input stitch
    #    (pad_t % row_block != 0), edge-block clamping and a partial input block.
    x_e = jax.random.normal(k5, (1, 3, 40, 200), dtype=jnp.float32)
    out_e = jax.block_until_ready(
        adaptive_pad_single(x_e, (96, 256), fill=fill, row_block=32))
    assert jnp.array_equal(out_e, _reference_pad(x_e, (96, 256), fill))

    # 5) Row-tiled path with pad_t a multiple of the row block (single-input
    #    kernel), zero width pad and a partial last output row block.
    x_f = jax.random.normal(k1, (1, 3, 40, 128), dtype=jnp.float32)
    out_f = jax.block_until_ready(
        adaptive_pad_single(x_f, (104, 128), fill=fill, row_block=32))
    assert jnp.array_equal(out_f, _reference_pad(x_f, (104, 128), fill))

    print("KERNEL_OK")
</pallas_src>

<mosaic_0001>
module attributes {stable_mosaic.version = 11 : i64} {
  func.func @kernel(%arg0: i32, %arg1: memref<4x16x16xf32, #tpu.memory_space<vmem>>, %arg2: memref<4x24x24xf32, #tpu.memory_space<vmem>>) attributes {dimension_semantics = [#tpu.dimension_semantics<parallel>], iteration_bounds = array<i64: 2>, scalar_prefetch = 0 : i64, scratch_operands = 0 : i64, tpu.core_type = #tpu.core_type<tc>, window_params = [{transform_indices = @transform_0, window_bounds = array<i64: 4, 16, 16>}, {transform_indices = @transform_1, window_bounds = array<i64: 4, 24, 24>}]} {
    %c0 = arith.constant 0 : index
    %c0_0 = arith.constant 0 : index
    %c0_1 = arith.constant 0 : index
    %0 = vector.load %arg1[%c0, %c0_0, %c0_1] : memref<4x16x16xf32, #tpu.memory_space<vmem>>, vector<4x16x16xf32>
    %cst = arith.constant 0.000000e+00 : f32
    %1 = vector.broadcast %cst : f32 to vector<4x16x4xf32>
    %cst_2 = arith.constant 0.000000e+00 : f32
    %2 = vector.broadcast %cst_2 : f32 to vector<4x16x4xf32>
    %3 = tpu.concatenate %1, %0, %2 in 2 : vector<4x16x4xf32>, vector<4x16x16xf32>, vector<4x16x4xf32> -> vector<4x16x24xf32>
    %cst_3 = arith.constant 0.000000e+00 : f32
    %4 = vector.broadcast %cst_3 : f32 to vector<4x4x24xf32>
    %cst_4 = arith.constant 0.000000e+00 : f32
    %5 = vector.broadcast %cst_4 : f32 to vector<4x4x24xf32>
    %6 = tpu.concatenate %4, %3, %5 in 1 : vector<4x4x24xf32>, vector<4x16x24xf32>, vector<4x4x24xf32> -> vector<4x24x24xf32>
    %c0_5 = arith.constant 0 : index
    %c0_6 = arith.constant 0 : index
    %c0_7 = arith.constant 0 : index
    %7 = vector.load %arg2[%c0_5, %c0_6, %c0_7] : memref<4x24x24xf32, #tpu.memory_space<vmem>>, vector<4x24x24xf32>
    tpu.vector_store %arg2[%c0_5, %c0_6, %c0_7], %6 {strides = array<i32>} : memref<4x24x24xf32, #tpu.memory_space<vmem>>, vector<4x24x24xf32>,
    return
  }
  func.func @transform_0(%arg0: i32) -> (i32, i32, i32) {
    %c0_i32 = arith.constant 0 : i32
    %c0_i32_0 = arith.constant 0 : i32
    %c0_i32_1 = arith.constant 0 : i32
    return %arg0, %c0_i32, %c0_i32_0 : i32, i32, i32
  }
  func.func @transform_1(%arg0: i32) -> (i32, i32, i32) {
    %c0_i32 = arith.constant 0 : i32
    %c0_i32_0 = arith.constant 0 : i32
    %c0_i32_1 = arith.constant 0 : i32
    return %arg0, %c0_i32, %c0_i32_0 : i32, i32, i32
  }
}

module attributes {stable_mosaic.version = 11 : i64} {
  func.func @kernel(%arg0: i32, %arg1: memref<4x12x14xf32, #tpu.memory_space<vmem>>, %arg2: memref<4x24x24xf32, #tpu.memory_space<vmem>>) attributes {dimension_semantics = [#tpu.dimension_semantics<parallel>], iteration_bounds = array<i64: 2>, scalar_prefetch = 0 : i64, scratch_operands = 0 : i64, tpu.core_type = #tpu.core_type<tc>, window_params = [{transform_indices = @transform_0, window_bounds = array<i64: 4, 12, 14>}, {transform_indices = @transform_1, window_bounds = array<i64: 4, 24, 24>}]} {
    %c0 = arith.constant 0 : index
    %c0_0 = arith.constant 0 : index
    %c0_1 = arith.constant 0 : index
    %0 = vector.load %arg1[%c0, %c0_0, %c0_1] : memref<4x12x14xf32, #tpu.memory_space<vmem>>, vector<4x12x14xf32>
    %cst = arith.constant 0.000000e+00 : f32
    %1 = vector.broadcast %cst : f32 to vector<4x12x5xf32>
    %cst_2 = arith.constant 0.000000e+00 : f32
    %2 = vector.broadcast %cst_2 : f32 to vector<4x12x5xf32>
    %3 = tpu.concatenate %1, %0, %2 in 2 : vector<4x12x5xf32>, vector<4x12x14xf32>, vector<4x12x5xf32> -> vector<4x12x24xf32>
    %cst_3 = arith.constant 0.000000e+00 : f32
    %4 = vector.broadcast %cst_3 : f32 to vector<4x6x24xf32>
    %cst_4 = arith.constant 0.000000e+00 : f32
    %5 = vector.broadcast %cst_4 : f32 to vector<4x6x24xf32>
    %6 = tpu.concatenate %4, %3, %5 in 1 : vector<4x6x24xf32>, vector<4x12x24xf32>, vector<4x6x24xf32> -> vector<4x24x24xf32>
    %c0_5 = arith.constant 0 : index
    %c0_6 = arith.constant 0 : index
    %c0_7 = arith.constant 0 : index
    %7 = vector.load %arg2[%c0_5, %c0_6, %c0_7] : memref<4x24x24xf32, #tpu.memory_space<vmem>>, vector<4x24x24xf32>
    tpu.vector_store %arg2[%c0_5, %c0_6, %c0_7], %6 {strides = array<i32>} : memref<4x24x24xf32, #tpu.memory_space<vmem>>, vector<4x24x24xf32>,
    return
  }
  func.func @transform_0(%arg0: i32) -> (i32, i32, i32) {
    %c0_i32 = arith.constant 0 : i32
    %c0_i32_0 = arith.constant 0 : i32
    %c0_i32_1 = arith.constant 0 : i32
    return %arg0, %c0_i32, %c0_i32_0 : i32, i32, i32
  }
  func.func @transform_1(%arg0: i32) -> (i32, i32, i32) {
    %c0_i32 = arith.constant 0 : i32
    %c0_i32_0 = arith.constant 0 : i32
    %c0_i32_1 = arith.constant 0 : i32
    return %arg0, %c0_i32, %c0_i32_0 : i32, i32, i32
  }
}

</mosaic_0001>

<bundles_post_ra>
// kernel: _lambda_.3
= control target key start
LH: loop header
LB: loop body
LE: loop exit
PB: predicated region body
PF: predicated region fallthrough
CT: control target
= control target key end

     0   :  { %6 = vsyncpa [#allocation3], 0  ;;  %s607_s0 = inlined_call_operand.vmem [shape: f32[8,12,14], index: 0, kind: input, shape index: {}]   ;;  %s608_s1 = inlined_call_operand.hbm [shape: f32[8,24,24], index: 1, kind: output, shape index: {}]  }
   0x1   :  { %8 = vsyncpa [#allocation3 + $0x1], 0  ;;  %s446_s6 = smov 0   ;;  %s448_s7 = smov 0  }
   0x2   :  { %s450_s8 = smov 0   ;;  %s452_s9 = smov 0  }
   0x3 LB: > { %s467_s10 = sadd.s32 4294967295, %s430_s9   ;;  %s311_s11 = sadd.s32 4294967294, %s430_s9   ;;  %s430_s9 = sphi %s452_s9, %s614_s9   ;;  %s426_s8 = sphi %s450_s8, %s613_s8   ;;  %s422_s7 = sphi %s448_s7, %s612_s7   ;;  %s418_s6 = sphi %s446_s6, %s611_s6  }
   0x4   : > { %s471_s12 = sadd.s32 1, %s430_s9   ;;  %s47_s13 = sadd.s32 1, %s426_s8 }
   0x5   : > { %s44_s14 = ssub.s32 %s430_s9, %s471_s12  ;;  %p57_p0 = scmp.ne.s32.totalorder %s426_s8, %s422_s7 }
   0x6   : > { %p45_p1 = scmp.eq.s32.totalorder %s44_s14, 0  ;;  %p58_p2 = scmp.eq.s32.totalorder %s467_s10, 1 }
   0x7   : > { %p63_p3 = scmp.ne.s32.totalorder %s422_s7, %s418_s6  ;;  %p64_p4 = scmp.eq.s32.totalorder %s311_s11, 1 }
   0x8   : > { %s482_s15 = scalar_select %p45_p1, %s426_s8, %s47_s13  }
   0x9   : > { %p484_p5 = por %p58_p2, %p57_p0  ;;  %p488_p6 = por %p64_p4, %p63_p3 }
   0xa   : > { %p314_p7 = scmp.ge.s32.totalorder %s430_s9, 1  ;;  %p92_p8 = scmp.lt.s32.totalorder %s430_s9, 3 }
   0xc   : > { %p93_p9 = pnand %p314_p7, %p92_p8 }
   0xd   : > { %s315_s18 = sshll.u32 (!%p93_p9), %s467_s10, 2  ;;  %s432_s23 = smov (!%p93_p9), 5   ;;  %vm161_vm0 = vcmask (!%p93_p9), 39936   ;;  %vm170_vm1 = vcmask (!%p93_p9), 154624   ;;  %vm187_vm2 = vcmask (!%p93_p9), 1045504   ;;  %vm221_vm3 = vcmask (!%p93_p9), 195584  }
   0xe   : > { %96 = sbr.rel (%p93_p9) target bundleno = 173 (0xad), region = 24  ;;  %p114_p10 = scmp.lt.s32.totalorder (!%p93_p9), %s315_s18, 7  ;;  %vm216_vm4 = vcmask (!%p93_p9), 1041408  }
   0xf   : > { %s110_s24 = sand.u32 (!%p93_p9), 1, %s422_s7   ;;  %s325_s27 = smul.u32 (!%p93_p9), 1536, %s467_s10 }
  0x10   : > { %s324_s25 = smul.u32 (!%p93_p9), 96, %s110_s24  ;;  %s566_s3 = scalar_lea.sflag (!%p93_p9), [#allocation3], %s110_s24 }
  0x11   : > { %s551_s2 = scalar_lea.hbm (!%p93_p9), %s608_s1, %s325_s27  ;;  %s433_s5 = smov (!%p93_p9), [#allocation2]  }
  0x12   : > { %s509_s26 = scalar_lea.vmem (!%p93_p9), [#allocation2], %s324_s25  ;;  %s372_s10 = sshll.u32 (!%p93_p9), %s433_s5, 4  ;;  %s373_s10 = int_to_ptr.vmem [resolvable:$false] %s372_s10 }
  0x13   : > { %s249_s28 = sshll.u32 (!%p93_p9), %s509_s26, 4  ;;  %s374_s11 = scalar_lea.vmem (!%p93_p9), %s373_s10, 3072  ;;  %s553_s28 = int_to_ptr.vmem [resolvable:$true] %s249_s28 }
  0x14   : > { %s368_s4 = scalar_lea.vmem (!%p93_p9), %s553_s28, 1536  ;;  %p375_p0 = scmp.lt.s32.totalorder (!%p93_p9), %s553_s28, %s373_s10 }
  0x15   : > { %s616_s18 = smov (!%p114_p10, %s315_s18), 7  ;;  %p369_p11 = scmp.ne.s32.totalorder %s553_s28, %s368_s4 }
  0x16   : > { %s323_s19 = sshll.u32 %s616_s18, 4  ;;  %p376_p1 = scmp.lt.s32.totalorder %s374_s11, %s368_s4 }
  0x17   : > { %s118_s22 = scalar_lea.vmem %s607_s0, %s323_s19  ;;  %p370_p12 = pnand %p369_p11, %p484_p5 }
  0x18   : > { %v123_v0 = vld [vmem:[%s118_s22 + $0x10] sm:$0xff]  ;;  %v121_v1 = vld [vmem:[%s118_s22] sm:$0xff]  ;;  %v124_v2 = vld [vmem:[%s118_s22 + $0x18] sm:$0xf]  ;;  %p377_p2 = por %p376_p1, %p375_p0 }
  0x19   : > { %141 = vrot.lane.b32.xlu1 %v123_v0, %s432_s23  ;;  %137 = vrot.lane.b32.xlu0 %v121_v1, %s432_s23  ;;  %v122_v3 = vld [vmem:[%s118_s22 + $0x8] sm:$0xf]  ;;  %v125_v5 = vld [vmem:[%s118_s22 + $0x20] sm:$0xff]  ;;  %p371_p13 = pneg %p370_p12 }
  0x1a   : > { %v126_v4 = vld [vmem:[%s118_s22 + $0x28] sm:$0xf]  ;;  %v128_v6 = vld [vmem:[%s118_s22 + $0x38] sm:$0xf]  ;;  %v127_v7 = vld [vmem:[%s118_s22 + $0x30] sm:$0xff] }
  0x1b   : > { %p378_p3 = pnand %p377_p2, %p371_p13 }
  0x1d   : > { %143 = vrot.lane.b32.xlu1 %v124_v2, %s432_s23  ;;  %139 = vrot.lane.b32.xlu0 %v122_v3, %s432_s23 }
  0x21   : > { %147 = vrot.lane.b32.xlu1 %v126_v4, %s432_s23  ;;  %145 = vrot.lane.b32.xlu0 %v125_v5, %s432_s23 }
  0x25   : > { %151 = vrot.lane.b32.xlu1 %v128_v6, %s432_s23  ;;  %149 = vrot.lane.b32.xlu0 %v127_v7, %s432_s23 }
  0x8b   : > { %v142_v8 = vpop.permute.xlu1 %141  ;;  %v138_v9 = vpop.permute.xlu0 %137 }
  0x8c   : > { %v164_v10 = vsel %vm161_vm0, 0.0, %v142_v8  ;;  %v162_v11 = vsel %vm161_vm0, 0.0, %v138_v9 }
  0x8d   : > { %v173_v12 = vsel %vm170_vm1, %v164_v10, 0.0  ;;  %v171_v13 = vsel %vm170_vm1, %v162_v11, 0.0 }
  0x8e   : > { %v191_v14 = vrot.slane %v173_v12, 2  ;;  %v188_v15 = vrot.slane %v171_v13, 2 }
  0x8f   : > { %v144_v16 = vpop.permute.xlu1 %143  ;;  %v140_v17 = vpop.permute.xlu0 %139 }
  0x90   : > { %v213_v18 = vsel %vm187_vm2, 0.0, %v191_v14  ;;  %v212_v19 = vsel %vm187_vm2, 0.0, %v188_v15  ;;  %v165_v20 = vsel %vm161_vm0, 0.0, %v144_v16  ;;  %v163_v21 = vsel %vm161_vm0, 0.0, %v140_v17 }
  0x91   : > { %225 = vst.msk [vmem:[%s509_s26 + $0x18] sm:$0xff] %vm221_vm3, %v213_v18  ;;  %222 = vst.msk [vmem:[%s509_s26] sm:$0xff] %vm221_vm3, %v212_v19  ;;  %v174_v22 = vsel %vm170_vm1, %v165_v20, 0.0  ;;  %v172_v23 = vsel %vm170_vm1, %v163_v21, 0.0 }
  0x92   : > { %v192_v24 = vrot.slane %v174_v22, 2  ;;  %v189_v25 = vrot.slane %v172_v23, 2 }
  0x93   : > { %v148_v26 = vpop.permute.xlu1 %147  ;;  %v146_v27 = vpop.permute.xlu0 %145 }
  0x94   : > { %v193_v28 = vsel %vm187_vm2, %v191_v14, %v192_v24  ;;  %v218_v29 = vsel %vm216_vm4, %v192_v24, 0.0  ;;  %v190_v30 = vsel %vm187_vm2, %v188_v15, %v189_v25  ;;  %v217_v31 = vsel %vm216_vm4, %v189_v25, 0.0 }
  0x95   : > { %226 = vst.msk [vmem:[%s509_s26 + $0x20] sm:$0xff] %vm221_vm3, %v193_v28  ;;  %227 = vst.msk [vmem:[%s509_s26 + $0x28] sm:$0xff] %vm221_vm3, %v218_v29  ;;  %v167_v32 = vsel %vm161_vm0, 0.0, %v148_v26  ;;  %v166_v33 = vsel %vm161_vm0, 0.0, %v146_v27 }
  0x96   : > { %223 = vst.msk [vmem:[%s509_s26 + $0x8] sm:$0xff] %vm221_vm3, %v190_v30  ;;  %224 = vst.msk [vmem:[%s509_s26 + $0x10] sm:$0xff] %vm221_vm3, %v217_v31  ;;  %v176_v34 = vsel %vm170_vm1, %v167_v32, 0.0  ;;  %v175_v35 = vsel %vm170_vm1, %v166_v33, 0.0 }
  0x97   : > { %v195_v36 = vrot.slane %v176_v34, 2  ;;  %v194_v37 = vrot.slane %v175_v35, 2  ;;  %v152_v38 = vpop.permute.xlu1 %151  ;;  %v150_v39 = vpop.permute.xlu0 %149 }
  0x98   : > { %v169_v40 = vsel %vm161_vm0, 0.0, %v152_v38  ;;  %v168_v41 = vsel %vm161_vm0, 0.0, %v150_v39 }
  0x99   : > { %v219_v42 = vsel %vm216_vm4, %v195_v36, 0.0  ;;  %v196_v43 = vsel %vm187_vm2, %v194_v37, %v195_v36  ;;  %v214_v44 = vsel %vm187_vm2, 0.0, %v194_v37  ;;  %v178_v45 = vsel %vm170_vm1, %v169_v40, 0.0 }
  0x9a   : > { %230 = vst.msk [vmem:[%s509_s26 + $0x40] sm:$0xff] %vm221_vm3, %v219_v42  ;;  %228 = vst.msk [vmem:[%s509_s26 + $0x30] sm:$0xff] %vm221_vm3, %v214_v44  ;;  %v198_v46 = vrot.slane %v178_v45, 2  ;;  %v177_v47 = vsel %vm170_vm1, %v168_v41, 0.0 }
  0x9b   : > { %229 = vst.msk [vmem:[%s509_s26 + $0x38] sm:$0xff] %vm221_vm3, %v196_v43  ;;  %v197_v48 = vrot.slane %v177_v47, 2 }
  0x9c   : > { %v220_v49 = vsel %vm216_vm4, %v198_v46, 0.0 }
  0x9d   : > { %233 = vst.msk [vmem:[%s509_s26 + $0x58] sm:$0xff] %vm221_vm3, %v220_v49  ;;  %v199_v50 = vsel %vm187_vm2, %v197_v48, %v198_v46  ;;  %v215_v51 = vsel %vm187_vm2, 0.0, %v197_v48 }
  0x9e   : > { %231 = vst.msk [vmem:[%s509_s26 + $0x48] sm:$0xff] %vm221_vm3, %v215_v51  ;;  %232 = vst.msk [vmem:[%s509_s26 + $0x50] sm:$0xff] %vm221_vm3, %v199_v50 }
  0x9f   : > { %381 = shalt.err (!%p378_p3)
}
  0xa0   : > { %s382_s13 = scalar_lea.hbm %s551_s2, 1536  ;;  %s386_s19 = scalar_lea.hbm %s608_s1, 3072 }
  0xa1   : > { %p383_p4 = scmp.ne.s32.totalorder %s551_s2, %s382_s13  ;;  %p387_p9 = scmp.lt.u32.totalorder %s551_s2, %s608_s1 }
  0xa2   : > { %p388_p10 = scmp.lt.u32.totalorder %s386_s19, %s382_s13  ;;  %p390_p12 = scmp.lt.u32.totalorder %s382_s13, %s551_s2 }
  0xa3   : > { %p384_p7 = pnand %p383_p4, %p484_p5 }
  0xa4   : > { %p389_p11 = por %p388_p10, %p387_p9 }
  0xa5   : > { %p385_p8 = pneg %p384_p7 }
  0xa6   : > { %p391_p13 = por %p390_p12, %p389_p11 }
  0xa8   : > { %p392_p0 = pnand %p391_p13, %p385_p8 }
  0xaa   : > { %395 = shalt.err (!%p392_p0)
}
  0xab   : > { %s434_s22 = smov 128   ;;  %s435_s23 = smov 8  }
  0xac   : > { %326 = dma.vmem_to_hbm [thread:$0]  (%p484_p5), %s553_s28, 1536, %s551_s2, %s566_s3, %s434_s22, %s434_s22, %s435_s23  }
  0xad PF: > { %p332_p1 = scmp.ge.s32.totalorder %s430_s9, 2  ;;  %s264_s24 = sand.u32 1, %s418_s6  }
  0xae   : > { %s265_s25 = scalar_lea.sflag [#allocation3], %s264_s24 }
  0xaf   : > { %p329_p2 = pnand %p332_p1, %p488_p6 }
  0xb1   : > { %413 = dma.done.wait (!%p329_p2), %s265_s25, 1536  }
  0xb2   : > { %415 = vsyncadd (!%p329_p2), %s265_s25, 4294965760  ;;  %p11_p3 = scmp.ge.s32.totalorder %s471_s12, 4   ;;  %s611_s6 = smov %s422_s7 }
  0xb3   : > { %s612_s7 = smov %s426_s8  ;;  %s613_s8 = smov %s482_s15 }
  0xb4   : > { %s614_s9 = smov %s471_s12  ;;  %13 = sbr.rel (!%p11_p3) target bundleno = 3 (0x3), region = 59 }
  0xbb   :  { %270 = vsyncpa [#allocation3], 1 }
  0xbc   :  { %272 = vsyncpa [#allocation3 + $0x1], 1 }

// kernel: _lambda_.2
= control target key start
LH: loop header
LB: loop body
LE: loop exit
PB: predicated region body
PF: predicated region fallthrough
CT: control target
= control target key end

     0   :  { %6 = vsyncpa [#allocation3], 0  ;;  %s606_s0 = inlined_call_operand.vmem [shape: f32[8,16,16], index: 0, kind: input, shape index: {}]   ;;  %s607_s1 = inlined_call_operand.hbm [shape: f32[8,24,24], index: 1, kind: output, shape index: {}]  }
   0x1   :  { %8 = vsyncpa [#allocation3 + $0x1], 0  ;;  %s445_s6 = smov 0   ;;  %s447_s7 = smov 0  }
   0x2   :  { %s449_s8 = smov 0   ;;  %s451_s9 = smov 0  }
   0x3 LB: > { %s466_s10 = sadd.s32 4294967295, %s429_s9   ;;  %s310_s11 = sadd.s32 4294967294, %s429_s9   ;;  %s429_s9 = sphi %s451_s9, %s613_s9   ;;  %s425_s8 = sphi %s449_s8, %s612_s8   ;;  %s421_s7 = sphi %s447_s7, %s611_s7   ;;  %s417_s6 = sphi %s445_s6, %s610_s6  }
   0x4   : > { %s470_s12 = sadd.s32 1, %s429_s9   ;;  %s47_s13 = sadd.s32 1, %s425_s8 }
   0x5   : > { %s44_s14 = ssub.s32 %s429_s9, %s470_s12  ;;  %p57_p0 = scmp.ne.s32.totalorder %s425_s8, %s421_s7 }
   0x6   : > { %p45_p1 = scmp.eq.s32.totalorder %s44_s14, 0  ;;  %p58_p2 = scmp.eq.s32.totalorder %s466_s10, 1 }
   0x7   : > { %p63_p3 = scmp.ne.s32.totalorder %s421_s7, %s417_s6  ;;  %p64_p4 = scmp.eq.s32.totalorder %s310_s11, 1 }
   0x8   : > { %s481_s15 = scalar_select %p45_p1, %s425_s8, %s47_s13  }
   0x9   : > { %p483_p5 = por %p58_p2, %p57_p0  ;;  %p487_p6 = por %p64_p4, %p63_p3 }
   0xa   : > { %p313_p7 = scmp.ge.s32.totalorder %s429_s9, 1  ;;  %p92_p8 = scmp.lt.s32.totalorder %s429_s9, 3 }
   0xc   : > { %p93_p9 = pnand %p313_p7, %p92_p8 }
   0xd   : > { %s314_s18 = sshll.u32 (!%p93_p9), %s466_s10, 2  ;;  %s431_s23 = smov (!%p93_p9), 4   ;;  %vm161_vm0 = vcmask (!%p93_p9), 31744   ;;  %vm170_vm1 = vcmask (!%p93_p9), 162816   ;;  %vm187_vm2 = vcmask (!%p93_p9), 1043456   ;;  %vm220_vm3 = vcmask (!%p93_p9), 195584  }
   0xe   : > { %96 = sbr.rel (%p93_p9) target bundleno = 173 (0xad), region = 24  ;;  %p114_p10 = scmp.lt.s32.totalorder (!%p93_p9), %s314_s18, 7 }
   0xf   : > { %s110_s24 = sand.u32 (!%p93_p9), 1, %s421_s7   ;;  %s324_s27 = smul.u32 (!%p93_p9), 1536, %s466_s10 }
  0x10   : > { %s323_s25 = smul.u32 (!%p93_p9), 96, %s110_s24  ;;  %s565_s3 = scalar_lea.sflag (!%p93_p9), [#allocation3], %s110_s24 }
  0x11   : > { %s550_s2 = scalar_lea.hbm (!%p93_p9), %s607_s1, %s324_s27  ;;  %s432_s5 = smov (!%p93_p9), [#allocation2]  }
  0x12   : > { %s508_s26 = scalar_lea.vmem (!%p93_p9), [#allocation2], %s323_s25  ;;  %s371_s10 = sshll.u32 (!%p93_p9), %s432_s5, 4  ;;  %s372_s10 = int_to_ptr.vmem [resolvable:$false] %s371_s10 }
  0x13   : > { %s248_s28 = sshll.u32 (!%p93_p9), %s508_s26, 4  ;;  %s373_s11 = scalar_lea.vmem (!%p93_p9), %s372_s10, 3072  ;;  %s552_s28 = int_to_ptr.vmem [resolvable:$true] %s248_s28 }
  0x14   : > { %s367_s4 = scalar_lea.vmem (!%p93_p9), %s552_s28, 1536  ;;  %p374_p0 = scmp.lt.s32.totalorder (!%p93_p9), %s552_s28, %s372_s10 }
  0x15   : > { %s615_s18 = smov (!%p114_p10, %s314_s18), 7  ;;  %p368_p11 = scmp.ne.s32.totalorder %s552_s28, %s367_s4 }
  0x16   : > { %s322_s19 = sshll.u32 %s615_s18, 4  ;;  %p375_p1 = scmp.lt.s32.totalorder %s373_s11, %s367_s4 }
  0x17   : > { %s118_s22 = scalar_lea.vmem %s606_s0, %s322_s19  ;;  %p369_p12 = pnand %p368_p11, %p483_p5 }
  0x18   : > { %v123_v0 = vld [vmem:[%s118_s22 + $0x10] sm:$0xff]  ;;  %v121_v1 = vld [vmem:[%s118_s22] sm:$0xff]  ;;  %v124_v2 = vld [vmem:[%s118_s22 + $0x18] sm:$0xff]  ;;  %p376_p2 = por %p375_p1, %p374_p0 }
  0x19   : > { %141 = vrot.lane.b32.xlu1 %v123_v0, %s431_s23  ;;  %137 = vrot.lane.b32.xlu0 %v121_v1, %s431_s23  ;;  %v122_v3 = vld [vmem:[%s118_s22 + $0x8] sm:$0xff]  ;;  %v125_v5 = vld [vmem:[%s118_s22 + $0x20] sm:$0xff]  ;;  %p370_p13 = pneg %p369_p12 }
  0x1a   : > { %v126_v4 = vld [vmem:[%s118_s22 + $0x28] sm:$0xff]  ;;  %v128_v6 = vld [vmem:[%s118_s22 + $0x38] sm:$0xff]  ;;  %v127_v7 = vld [vmem:[%s118_s22 + $0x30] sm:$0xff] }
  0x1b   : > { %p377_p3 = pnand %p376_p2, %p370_p13 }
  0x1d   : > { %143 = vrot.lane.b32.xlu1 %v124_v2, %s431_s23  ;;  %139 = vrot.lane.b32.xlu0 %v122_v3, %s431_s23 }
  0x21   : > { %147 = vrot.lane.b32.xlu1 %v126_v4, %s431_s23  ;;  %145 = vrot.lane.b32.xlu0 %v125_v5, %s431_s23 }
  0x25   : > { %151 = vrot.lane.b32.xlu1 %v128_v6, %s431_s23  ;;  %149 = vrot.lane.b32.xlu0 %v127_v7, %s431_s23 }
  0x8b   : > { %v142_v8 = vpop.permute.xlu1 %141  ;;  %v138_v9 = vpop.permute.xlu0 %137 }
  0x8c   : > { %v164_v10 = vsel %vm161_vm0, 0.0, %v142_v8  ;;  %v162_v11 = vsel %vm161_vm0, 0.0, %v138_v9 }
  0x8d   : > { %v173_v12 = vsel %vm170_vm1, %v164_v10, 0.0  ;;  %v171_v13 = vsel %vm170_vm1, %v162_v11, 0.0 }
  0x8e   : > { %v191_v14 = vrot.slane %v173_v12, 4  ;;  %v188_v15 = vrot.slane %v171_v13, 4 }
  0x8f   : > { %v144_v16 = vpop.permute.xlu1 %143  ;;  %v140_v17 = vpop.permute.xlu0 %139 }
  0x90   : > { %v213_v18 = vsel %vm187_vm2, 0.0, %v191_v14  ;;  %v212_v19 = vsel %vm187_vm2, 0.0, %v188_v15  ;;  %v165_v20 = vsel %vm161_vm0, 0.0, %v144_v16  ;;  %v163_v21 = vsel %vm161_vm0, 0.0, %v140_v17 }
  0x91   : > { %224 = vst.msk [vmem:[%s508_s26 + $0x18] sm:$0xff] %vm220_vm3, %v213_v18  ;;  %221 = vst.msk [vmem:[%s508_s26] sm:$0xff] %vm220_vm3, %v212_v19  ;;  %v174_v22 = vsel %vm170_vm1, %v165_v20, 0.0  ;;  %v172_v23 = vsel %vm170_vm1, %v163_v21, 0.0 }
  0x92   : > { %v192_v24 = vrot.slane %v174_v22, 4  ;;  %v189_v25 = vrot.slane %v172_v23, 4 }
  0x93   : > { %v148_v26 = vpop.permute.xlu1 %147  ;;  %v146_v27 = vpop.permute.xlu0 %145 }
  0x94   : > { %v193_v28 = vsel %vm187_vm2, %v191_v14, %v192_v24  ;;  %v217_v29 = vsel %vm187_vm2, %v192_v24, 0.0  ;;  %v190_v30 = vsel %vm187_vm2, %v188_v15, %v189_v25  ;;  %v216_v31 = vsel %vm187_vm2, %v189_v25, 0.0 }
  0x95   : > { %225 = vst.msk [vmem:[%s508_s26 + $0x20] sm:$0xff] %vm220_vm3, %v193_v28  ;;  %226 = vst.msk [vmem:[%s508_s26 + $0x28] sm:$0xff] %vm220_vm3, %v217_v29  ;;  %v167_v32 = vsel %vm161_vm0, 0.0, %v148_v26  ;;  %v166_v33 = vsel %vm161_vm0, 0.0, %v146_v27 }
  0x96   : > { %222 = vst.msk [vmem:[%s508_s26 + $0x8] sm:$0xff] %vm220_vm3, %v190_v30  ;;  %223 = vst.msk [vmem:[%s508_s26 + $0x10] sm:$0xff] %vm220_vm3, %v216_v31  ;;  %v176_v34 = vsel %vm170_vm1, %v167_v32, 0.0  ;;  %v175_v35 = vsel %vm170_vm1, %v166_v33, 0.0 }
  0x97   : > { %v195_v36 = vrot.slane %v176_v34, 4  ;;  %v194_v37 = vrot.slane %v175_v35, 4  ;;  %v152_v38 = vpop.permute.xlu1 %151  ;;  %v150_v39 = vpop.permute.xlu0 %149 }
  0x98   : > { %v169_v40 = vsel %vm161_vm0, 0.0, %v152_v38  ;;  %v168_v41 = vsel %vm161_vm0, 0.0, %v150_v39 }
  0x99   : > { %v218_v42 = vsel %vm187_vm2, %v195_v36, 0.0  ;;  %v196_v43 = vsel %vm187_vm2, %v194_v37, %v195_v36  ;;  %v214_v44 = vsel %vm187_vm2, 0.0, %v194_v37  ;;  %v178_v45 = vsel %vm170_vm1, %v169_v40, 0.0 }
  0x9a   : > { %229 = vst.msk [vmem:[%s508_s26 + $0x40] sm:$0xff] %vm220_vm3, %v218_v42  ;;  %227 = vst.msk [vmem:[%s508_s26 + $0x30] sm:$0xff] %vm220_vm3, %v214_v44  ;;  %v198_v46 = vrot.slane %v178_v45, 4  ;;  %v177_v47 = vsel %vm170_vm1, %v168_v41, 0.0 }
  0x9b   : > { %228 = vst.msk [vmem:[%s508_s26 + $0x38] sm:$0xff] %vm220_vm3, %v196_v43  ;;  %v197_v48 = vrot.slane %v177_v47, 4 }
  0x9c   : > { %v219_v49 = vsel %vm187_vm2, %v198_v46, 0.0 }
  0x9d   : > { %232 = vst.msk [vmem:[%s508_s26 + $0x58] sm:$0xff] %vm220_vm3, %v219_v49  ;;  %v199_v50 = vsel %vm187_vm2, %v197_v48, %v198_v46  ;;  %v215_v51 = vsel %vm187_vm2, 0.0, %v197_v48 }
  0x9e   : > { %230 = vst.msk [vmem:[%s508_s26 + $0x48] sm:$0xff] %vm220_vm3, %v215_v51  ;;  %231 = vst.msk [vmem:[%s508_s26 + $0x50] sm:$0xff] %vm220_vm3, %v199_v50 }
  0x9f   : > { %380 = shalt.err (!%p377_p3)
}
  0xa0   : > { %s381_s13 = scalar_lea.hbm %s550_s2, 1536  ;;  %s385_s19 = scalar_lea.hbm %s607_s1, 3072 }
  0xa1   : > { %p382_p4 = scmp.ne.s32.totalorder %s550_s2, %s381_s13  ;;  %p386_p9 = scmp.lt.u32.totalorder %s550_s2, %s607_s1 }
  0xa2   : > { %p387_p10 = scmp.lt.u32.totalorder %s385_s19, %s381_s13  ;;  %p389_p12 = scmp.lt.u32.totalorder %s381_s13, %s550_s2 }
  0xa3   : > { %p383_p7 = pnand %p382_p4, %p483_p5 }
  0xa4   : > { %p388_p11 = por %p387_p10, %p386_p9 }
  0xa5   : > { %p384_p8 = pneg %p383_p7 }
  0xa6   : > { %p390_p13 = por %p389_p12, %p388_p11 }
  0xa8   : > { %p391_p0 = pnand %p390_p13, %p384_p8 }
  0xaa   : > { %394 = shalt.err (!%p391_p0)
}
  0xab   : > { %s433_s22 = smov 128   ;;  %s434_s23 = smov 8  }
  0xac   : > { %325 = dma.vmem_to_hbm [thread:$0]  (%p483_p5), %s552_s28, 1536, %s550_s2, %s565_s3, %s433_s22, %s433_s22, %s434_s23  }
  0xad PF: > { %p331_p1 = scmp.ge.s32.totalorder %s429_s9, 2  ;;  %s263_s24 = sand.u32 1, %s417_s6  }
  0xae   : > { %s264_s25 = scalar_lea.sflag [#allocation3], %s263_s24 }
  0xaf   : > { %p328_p2 = pnand %p331_p1, %p487_p6 }
  0xb1   : > { %412 = dma.done.wait (!%p328_p2), %s264_s25, 1536  }
  0xb2   : > { %414 = vsyncadd (!%p328_p2), %s264_s25, 4294965760  ;;  %p11_p3 = scmp.ge.s32.totalorder %s470_s12, 4   ;;  %s610_s6 = smov %s421_s7 }
  0xb3   : > { %s611_s7 = smov %s425_s8  ;;  %s612_s8 = smov %s481_s15 }
  0xb4   : > { %s613_s9 = smov %s470_s12  ;;  %13 = sbr.rel (!%p11_p3) target bundleno = 3 (0x3), region = 59 }
  0xbb   :  { %269 = vsyncpa [#allocation3], 1 }
  0xbc   :  { %271 = vsyncpa [#allocation3 + $0x1], 1 }

</bundles_post_ra>
